<compile_context>
chip_gen: v5e
topology: v5e:2x2
jax: 0.10.0
libtpu: 0.0.40
codegen_flags: <defaults>
</compile_context>

<pallas_src>
import jax
import jax.numpy as jnp
from jax.experimental import pallas as pl
from jax.experimental.pallas import tpu as pltpu


def _conv1x1_kernel(x_ref, w_ref, b_ref, o_ref):
    # x_ref: (1, C_in, S)   spatial tile in the lane axis
    # w_ref: (C_out, C_in)  resident weight (PyTorch layout, squeezed)
    # b_ref: (C_out, 1)     resident bias
    # o_ref: (1, C_out, S)
    acc = jnp.dot(w_ref[...], x_ref[0], preferred_element_type=jnp.float32)
    o_ref[0] = (acc + b_ref[...]).astype(o_ref.dtype)


def _round_up(x, m):
    return ((x + m - 1) // m) * m


def _vmem_capacity_bytes():
    # Generation-aware VMEM size (128 MiB v5e/v6e, 64 MiB per TC on v7x).
    try:
        return int(pltpu.get_tpu_info().vmem_capacity_bytes)
    except Exception:
        return 64 * 1024 * 1024  # conservative fallback (v7x per-TC size)


def _pick_spatial_tile(HW, C_in, C_out, itemsize, n_batch, vmem_cap, s_tile):
    hw_lanes = max(128, _round_up(HW, 128))   # spatial extent at lane granularity
    # Keep the double-buffered (x block + out block) working set under ~1/4 of VMEM.
    per_col = 2 * (C_in + C_out) * itemsize
    st_budget = max(128, ((vmem_cap // 4) // per_col) // 128 * 128)
    st = min(int(s_tile), hw_lanes, st_budget)
    st = max(128, (st // 128) * 128)
    # Megacore (v7x, 2 TensorCores): with N == 1 the batch axis cannot be
    # split, so make sure the spatial axis contributes several grid steps.
    if n_batch == 1 and hw_lanes > 128:
        cap = max(128, _round_up(-(-HW // 8), 128))
        st = min(st, cap)
    return st


def outconv_forward(x_nchw, weight, bias, *, s_tile=65536):
    """1x1 Conv2d (nn.Conv2d(in_ch, out_ch, 1)) forward.

    x_nchw : (N, C_in, H, W)     -- PyTorch NCHW convention
    weight : (C_out, C_in, 1, 1) -- PyTorch Conv2d weight layout
    bias   : (C_out,)
    returns: (N, C_out, H, W)
    """
    N, C_in, H, W = x_nchw.shape
    C_out = weight.shape[0]
    HW = H * W
    itemsize = jnp.dtype(x_nchw.dtype).itemsize

    # (N, C_in, H, W) -> (N, C_in, H*W): free reshape, no data movement.
    x3 = x_nchw.reshape(N, C_in, HW)
    w2d = weight.reshape(C_out, C_in)   # (C_out, C_in)
    b2d = bias.reshape(C_out, 1)        # (C_out, 1)

    vmem_cap = _vmem_capacity_bytes()
    st = _pick_spatial_tile(HW, C_in, C_out, itemsize, N, vmem_cap, s_tile)

    # No host-side padding: ragged boundary block is masked by Pallas.
    grid = (N, pl.cdiv(HW, st))

    # VMEM limit derived from the actual block footprint (double-buffered
    # x/out blocks + resident weight/bias, padded to (8,128) tiles) + headroom.
    x_block_bytes = C_in * st * itemsize
    o_block_bytes = C_out * st * itemsize
    wb_bytes = (_round_up(C_out, 8) * _round_up(C_in, 128)
                + _round_up(C_out, 8) * 128) * itemsize
    usage = 2 * (x_block_bytes + o_block_bytes) + 2 * wb_bytes
    vmem_limit = int(min(int(vmem_cap * 0.9),
                         max(2 * usage, 16 * 1024 * 1024)))

    cost = pl.CostEstimate(
        flops=2 * N * HW * C_in * C_out,
        transcendentals=0,
        bytes_accessed=(C_in + C_out) * N * HW * itemsize
                       + (C_out * C_in + C_out) * itemsize,
    )

    out = pl.pallas_call(
        _conv1x1_kernel,
        out_shape=jax.ShapeDtypeStruct((N, C_out, HW), x_nchw.dtype),
        grid_spec=pltpu.PrefetchScalarGridSpec(
            num_scalar_prefetch=0,
            grid=grid,
            in_specs=[
                pl.BlockSpec((1, C_in, st), lambda n, s: (n, 0, s)),
                pl.BlockSpec((C_out, C_in), lambda n, s: (0, 0)),
                pl.BlockSpec((C_out, 1), lambda n, s: (0, 0)),
            ],
            out_specs=pl.BlockSpec((1, C_out, st), lambda n, s: (n, 0, s)),
        ),
        compiler_params=pltpu.CompilerParams(
            dimension_semantics=("parallel", "parallel"),
            vmem_limit_bytes=vmem_limit),
        cost_estimate=cost,
    )(x3, w2d, b2d)

    return out.reshape(N, C_out, H, W)


if __name__ == "__main__":
    key = jax.random.PRNGKey(0)
    k_x, k_w, k_b = jax.random.split(key, 3)

    N, C_in, H, W = 2, 4, 16, 16
    C_out = 6

    x = jax.random.normal(k_x, (N, C_in, H, W), dtype=jnp.float32)
    # deterministic synthetic params (shapes as nn.Conv2d(in_ch, out_ch, 1))
    weight = jax.random.normal(k_w, (C_out, C_in, 1, 1), dtype=jnp.float32) * 0.1
    bias = jax.random.normal(k_b, (C_out,), dtype=jnp.float32) * 0.1

    y = outconv_forward(x, weight, bias)
    jax.block_until_ready(y)

    # correctness check against plain-JAX reference of the 1x1 conv
    ref = (jnp.einsum("nchw,oc->nohw", x, weight.reshape(C_out, C_in))
           + bias.reshape(1, C_out, 1, 1))
    assert y.shape == (N, C_out, H, W)
    assert jnp.allclose(y, ref, atol=1e-5, rtol=1e-5)

    # Ragged spatial extent (H*W not a multiple of 128) exercises the masked
    # boundary block — no host-side pad/slice copies are involved anymore.
    x2 = jax.random.normal(k_x, (1, C_in, 10, 13), dtype=jnp.float32)
    y2 = outconv_forward(x2, weight, bias)
    jax.block_until_ready(y2)
    ref2 = (jnp.einsum("nchw,oc->nohw", x2, weight.reshape(C_out, C_in))
            + bias.reshape(1, C_out, 1, 1))
    assert y2.shape == (1, C_out, 10, 13)
    assert jnp.allclose(y2, ref2, atol=1e-5, rtol=1e-5)

    print("KERNEL_OK")
</pallas_src>

<mosaic_0001>
module attributes {stable_mosaic.version = 11 : i64} {
  func.func @_conv1x1_kernel(%arg0: i32, %arg1: i32, %arg2: memref<1x4x256xf32, #tpu.memory_space<vmem>>, %arg3: memref<6x4xf32, #tpu.memory_space<vmem>>, %arg4: memref<6x1xf32, #tpu.memory_space<vmem>>, %arg5: memref<1x6x256xf32, #tpu.memory_space<vmem>>) attributes {dimension_semantics = [#tpu.dimension_semantics<parallel>, #tpu.dimension_semantics<parallel>], iteration_bounds = array<i64: 2, 1>, scalar_prefetch = 0 : i64, scratch_operands = 0 : i64, tpu.core_type = #tpu.core_type<tc>, window_params = [{transform_indices = @transform_0, window_bounds = array<i64: 1, 4, 256>}, {pipeline_mode = #tpu.pipeline_mode<synchronous>, transform_indices = @transform_1, window_bounds = array<i64: 6, 4>}, {pipeline_mode = #tpu.pipeline_mode<synchronous>, transform_indices = @transform_2, window_bounds = array<i64: 6, 1>}, {transform_indices = @transform_3, window_bounds = array<i64: 1, 6, 256>}]} {
    %c0 = arith.constant 0 : index
    %c0_0 = arith.constant 0 : index
    %0 = vector.load %arg3[%c0, %c0_0] : memref<6x4xf32, #tpu.memory_space<vmem>>, vector<6x4xf32>
    %c0_1 = arith.constant 0 : index
    %c0_2 = arith.constant 0 : index
    %c0_3 = arith.constant 0 : index
    %1 = vector.load %arg2[%c0_1, %c0_2, %c0_3] : memref<1x4x256xf32, #tpu.memory_space<vmem>>, vector<1x4x256xf32>
    %2 = vector.shape_cast %1 : vector<1x4x256xf32> to vector<4x256xf32>
    %cst = arith.constant dense<0.000000e+00> : vector<6x256xf32>
    %3 = tpu.matmul %0, %2, %cst {dimension_numbers = #tpu.dot_dimension_numbers<[1], [0], [0], [1], [0, 0, 1, 1], [], []>} : vector<6x4xf32>, vector<4x256xf32>, vector<6x256xf32> -> vector<6x256xf32>
    %c0_4 = arith.constant 0 : index
    %c0_5 = arith.constant 0 : index
    %4 = vector.load %arg4[%c0_4, %c0_5] : memref<6x1xf32, #tpu.memory_space<vmem>>, vector<6x1xf32>
    %5 = vector.broadcast %4 : vector<6x1xf32> to vector<6x256xf32>
    %6 = arith.addf %3, %5 : vector<6x256xf32>
    %c0_6 = arith.constant 0 : index
    %c0_7 = arith.constant 0 : index
    %c0_8 = arith.constant 0 : index
    %7 = vector.load %arg5[%c0_6, %c0_7, %c0_8] : memref<1x6x256xf32, #tpu.memory_space<vmem>>, vector<1x6x256xf32>
    %8 = vector.shape_cast %7 : vector<1x6x256xf32> to vector<6x256xf32>
    %9 = vector.shape_cast %6 : vector<6x256xf32> to vector<1x6x256xf32>
    tpu.vector_store %arg5[%c0_6, %c0_7, %c0_8], %9 {strides = array<i32>} : memref<1x6x256xf32, #tpu.memory_space<vmem>>, vector<1x6x256xf32>,
    return
  }
  func.func @transform_0(%arg0: i32, %arg1: i32) -> (i32, i32, i32) {
    %c0_i32 = arith.constant 0 : i32
    %c0_i32_0 = arith.constant 0 : i32
    return %arg0, %c0_i32, %arg1 : i32, i32, i32
  }
  func.func @transform_1(%arg0: i32, %arg1: i32) -> (i32, i32) {
    %c0_i32 = arith.constant 0 : i32
    %c0_i32_0 = arith.constant 0 : i32
    %c0_i32_1 = arith.constant 0 : i32
    return %c0_i32, %c0_i32_0 : i32, i32
  }
  func.func @transform_2(%arg0: i32, %arg1: i32) -> (i32, i32) {
    %c0_i32 = arith.constant 0 : i32
    %c0_i32_0 = arith.constant 0 : i32
    %c0_i32_1 = arith.constant 0 : i32
    return %c0_i32, %c0_i32_0 : i32, i32
  }
  func.func @transform_3(%arg0: i32, %arg1: i32) -> (i32, i32, i32) {
    %c0_i32 = arith.constant 0 : i32
    %c0_i32_0 = arith.constant 0 : i32
    return %arg0, %c0_i32, %arg1 : i32, i32, i32
  }
}

</mosaic_0001>

<bundles_post_ra>
// kernel: tpu_custom_call.1
= control target key start
LH: loop header
LB: loop body
LE: loop exit
PB: predicated region body
PF: predicated region fallthrough
CT: control target
= control target key end

     0   :  { %s448_s12 = smov 0   ;;  %s450_s13 = smov 0   ;;  %s487_s0 = inlined_call_operand.vmem [shape: f32[2,4,256], index: 0, kind: input, shape index: {}]   ;;  %s488_s1 = inlined_call_operand.vmem [shape: f32[6,4], index: 1, kind: input, shape index: {}]   ;;  %s489_s2 = inlined_call_operand.vmem [shape: f32[6,1], index: 2, kind: input, shape index: {}]   ;;  %s490_s3 = inlined_call_operand.vmem [shape: f32[2,6,256], index: 3, kind: output, shape index: {}]  }
   0x1   :  { %s452_s14 = smov 0  }
   0x2 LB: > { %s25_s15 = sadd.s32 1, %s421_s13  ;;  %p364_p0 = scmp.ge.s32.totalorder %s425_s14, 1  ;;  %s425_s14 = sphi %s452_s14, %s13_s14   ;;  %s421_s13 = sphi %s450_s13, %s492_s13   ;;  %s417_s12 = sphi %s448_s12, %s491_s12  }
   0x3   : > { %p27_p1 = scmp.ge.s32.totalorder %s25_s15, 2  ;;  %p158_p2 = scmp.lt.s32.totalorder %s425_s14, 3 }
   0x5   : > { %s494_s15 = smov (%p27_p1, %s25_s15), 0  ;;  %p159_p3 = pnand %p364_p0, %p158_p2 }
   0x6   : > { %p191_p4 = scmp.lt.s32.totalorder (!%p159_p3), %s417_s12, 1 }
   0x7   : > { %162 = sbr.rel (%p159_p3) target bundleno = 155 (0x9b), region = 32 }
   0xc   : > { %v427_v0 = vmov 0   ;;  %v212_v1 = vld [vmem:[%s489_s2] sm:$0x3f]  ;;  %s496_s12 = smov (!%p191_p4, %s417_s12), 1  ;;  %vm226_vm0 = vcmask 1043456   ;;  %vm222_vm1 = vcmask 31744  }
   0xd   : > { %402 = vset.pattern.permute.xlu0 %v427_v0  ;;  %s375_s18 = sshll.u32 %s496_s12, 3  ;;  %v210_v3 = vld [vmem:[%s488_s1] sm:$0x3f]  ;;  %s376_s24 = sshll.u32 %s496_s12, 4 }
   0xe   : > { %215 = vperm.xlu0 %402, %v212_v1   ;;  %s198_s21 = scalar_lea.vmem %s487_s0, %s375_s18  ;;  %s208_s27 = scalar_lea.vmem %s490_s3, %s376_s24 }
   0xf   : > { %v211_v2 = vld [vmem:[%s198_s21] sm:$0xff] }
  0x10   : > { %219 = vst [vmem:[#allocation1] ss:$2 sm:$0xff] %v211_v2 }
  0x17   : > { %v220_v4 = vld.sshfl [vmem:[#allocation1] sm:$0xff pattern:$0x75316420]  ;;  %v221_v5 = vld.sshfl [vmem:[#allocation1 + $0x8] sm:$0xff pattern:$0x75316420] }
  0x18   : > { %369 = vmatpush.msk.msra.mxu0 %vm226_vm0, %v220_v4  ;;  %371 = vmatpush.msk.msra.mxu1 %vm226_vm0, %v221_v5 }
  0x19   : > { %370 = vmatmul.msk.f32.vlgmr.msra.gmra.mxu0 %vm222_vm1, %v210_v3  ;;  %372 = vmatmul.msk.f32.vlgmr.msra.gmra.mxu1 %vm222_vm1, %v210_v3 }
  0x80   : > { %v216_v6 = vpop.permute.xlu0 %215 }
  0x96   : > { %v248_v7 = vpop.f32.mrf.mxu0  ;;  %v268_v8 = vpop.f32.mrf.mxu1 }
  0x97   : > { %v249_v9 = vadd.f32 %v248_v7, %v216_v6  ;;  %v269_v10 = vadd.f32 %v268_v8, %v216_v6 }
  0x99   : > { %271 = vst [vmem:[%s208_s27] sm:$0x3f] %v249_v9 }
  0x9a   : > { %272 = vst [vmem:[%s208_s27 + $0x8] sm:$0x3f] %v269_v10 }
  0x9b PF: > { %s13_s14 = sadd.s32 1, %s425_s14   ;;  %s491_s12 = smov %s421_s13 }
  0x9c   : > { %p10_p5 = scmp.ge.s32.totalorder %s13_s14, 4   ;;  %s492_s13 = smov %s494_s15 }
  0x9e   :  { %12 = sbr.rel (!%p10_p5) target bundleno = 2 (0x2), region = 62 }

</bundles_post_ra>
